<compile_context>
chip_gen: v7x
topology: tpu7x:2x2x1
jax: 0.10.0
libtpu: 0.0.40
codegen_flags: <defaults>
</compile_context>

<pallas_src>
import jax
import jax.numpy as jnp
from jax.experimental import pallas as pl
from jax.experimental.pallas import tpu as pltpu

DIM = 256
IN_CHANNELS = [128, 256]          # small stand-ins for [1024, 2048]
BN_EPS = 1e-5


def _split_embedding_dim(dim, parts):
    tmp = [dim // parts] * parts
    if sum(tmp) != dim:
        res = dim % parts
        for i in range(1, res + 1):
            tmp[-i] += 1
    assert sum(tmp) == dim
    return tmp


INDV_DIMS = _split_embedding_dim(DIM, len(IN_CHANNELS))   # [128, 128]
D1, D2 = INDV_DIMS


def _round_up(x, m):
    return ((x + m - 1) // m) * m


# --------------------------------------------------------------------------
# Kernel: one batch tile per grid step.
#   rs_ref     : SMEM (2,) f32  -> [rescaler_scale, rescaler_shift]
#   x1_ref     : (TB, C1) bf16      x2_ref : (TB, C2) bf16
#   w1_ref     : (C1, D1) bf16      w2_ref : (C2, D2) bf16   (BN folded in)
#   b1_ref     : (1, D1) f32        b2_ref : (1, D2) f32     (BN folded in)
#   emb_ref    : (TB, DIM) f32      norm_ref: (TB, 1) f32
# --------------------------------------------------------------------------
def nae_kernel(rs_ref, x1_ref, x2_ref, w1_ref, b1_ref, w2_ref, b2_ref,
               emb_ref, norm_ref):
    # Linear (+ folded eval-mode BN) on the MXU, f32 accumulation.
    e1 = jnp.dot(x1_ref[...], w1_ref[...],
                 preferred_element_type=jnp.float32) + b1_ref[...]
    e2 = jnp.dot(x2_ref[...], w2_ref[...],
                 preferred_element_type=jnp.float32) + b2_ref[...]

    # L2 norm without materializing a concatenated (TB, DIM) temporary.
    sumsq = (jnp.sum(e1 * e1, axis=-1, keepdims=True) +
             jnp.sum(e2 * e2, axis=-1, keepdims=True))          # (TB, 1)

    # One EUP rsqrt + broadcast multiply instead of sqrt + divide.
    # clamp(norm, 1e-12) <=> clamp(sumsq, 1e-24) under rsqrt.
    inv = jax.lax.rsqrt(jnp.maximum(sumsq, 1e-24))              # 1 / max(||e||, 1e-12)

    emb_ref[:, :D1] = (e1 * inv).astype(emb_ref.dtype)
    emb_ref[:, D1:] = (e2 * inv).astype(emb_ref.dtype)

    # Rescaler BatchNorm1d(1) in eval mode == scalar affine on the UNclamped norm.
    # (norm output is tiny; masked (TB,1) stores are negligible here.)
    norms = sumsq * inv                                         # = sqrt(sumsq)
    norm_ref[...] = norms * rs_ref[0] + rs_ref[1]


def init_params(key):
    d1, d2 = INDV_DIMS
    c1, c2 = IN_CHANNELS
    k1, k2, k3, k4 = jax.random.split(key, 4)
    params = {
        # projector for feat_res4: Linear(c1, d1) + BatchNorm1d(d1)
        'w1':    0.01 * jax.random.normal(k1, (c1, d1), jnp.float32),
        'b1':    jnp.zeros((1, d1), jnp.float32),
        'g1':    0.01 * jax.random.normal(k2, (1, d1), jnp.float32),
        'beta1': jnp.zeros((1, d1), jnp.float32),
        'rm1':   jnp.zeros((1, d1), jnp.float32),
        'rv1':   jnp.ones((1, d1), jnp.float32),
        # projector for feat_res5: Linear(c2, d2) + BatchNorm1d(d2)
        'w2':    0.01 * jax.random.normal(k3, (c2, d2), jnp.float32),
        'b2':    jnp.zeros((1, d2), jnp.float32),
        'g2':    0.01 * jax.random.normal(k4, (1, d2), jnp.float32),
        'beta2': jnp.zeros((1, d2), jnp.float32),
        'rm2':   jnp.zeros((1, d2), jnp.float32),
        'rv2':   jnp.ones((1, d2), jnp.float32),
        # rescaler BatchNorm1d(1): default init gamma=1, beta=0
        'rs_g':  jnp.ones((1, 1), jnp.float32),
        'rs_b':  jnp.zeros((1, 1), jnp.float32),
        'rs_m':  jnp.zeros((1, 1), jnp.float32),
        'rs_v':  jnp.ones((1, 1), jnp.float32),
    }
    return params


def _flatten_fc_input(x):
    if x.ndim == 4:
        assert x.shape[2:] == (1, 1)
        return x.reshape(x.shape[0], -1)
    return x


def _fold_bn_into_linear(w, b, gamma, beta, rm, rv):
    """Eval-mode BN folded into the preceding Linear (exact)."""
    scale = gamma * jax.lax.rsqrt(rv + BN_EPS)        # (1, d)
    w_f = w * scale                                    # (C, d)
    b_f = (b - rm) * scale + beta                      # (1, d)
    return w_f, b_f


def norm_aware_embedding(featmaps, params, *, block_b=128):
    """featmaps: dict {'feat_res4': (B,C1,1,1), 'feat_res5': (B,C2,1,1)}."""
    x1 = _flatten_fc_input(featmaps['feat_res4']).astype(jnp.float32)
    x2 = _flatten_fc_input(featmaps['feat_res5']).astype(jnp.float32)
    B = x1.shape[0]
    c1, c2 = IN_CHANNELS

    # --- fold eval-mode BN into the Linear layers (done once, in the wrapper) ---
    w1f, b1f = _fold_bn_into_linear(params['w1'], params['b1'], params['g1'],
                                    params['beta1'], params['rm1'], params['rv1'])
    w2f, b2f = _fold_bn_into_linear(params['w2'], params['b2'], params['g2'],
                                    params['beta2'], params['rm2'], params['rv2'])
    # rescaler BatchNorm1d(1) eval mode -> scalar (scale, shift) in SMEM
    rs_scale = params['rs_g'] * jax.lax.rsqrt(params['rs_v'] + BN_EPS)
    rs_shift = params['rs_b'] - params['rs_m'] * rs_scale
    rs = jnp.concatenate([rs_scale.reshape(-1), rs_shift.reshape(-1)]).astype(jnp.float32)

    # --- bf16 on the MXU, f32 accumulation ---
    w1_bf, w2_bf = w1f.astype(jnp.bfloat16), w2f.astype(jnp.bfloat16)

    # --- batch tiling (pad B up to a multiple of the tile) ---
    tb = min(_round_up(block_b, 8), _round_up(B, 8))
    b_pad = _round_up(B, tb)
    if b_pad != B:
        x1 = jnp.pad(x1, ((0, b_pad - B), (0, 0)))
        x2 = jnp.pad(x2, ((0, b_pad - B), (0, 0)))
    x1_bf, x2_bf = x1.astype(jnp.bfloat16), x2.astype(jnp.bfloat16)
    grid = (b_pad // tb,)

    grid_spec = pltpu.PrefetchScalarGridSpec(
        num_scalar_prefetch=1,                       # rs -> SMEM
        grid=grid,
        in_specs=[
            pl.BlockSpec((tb, c1), lambda i, rs: (i, 0)),   # x1 tile
            pl.BlockSpec((tb, c2), lambda i, rs: (i, 0)),   # x2 tile
            pl.BlockSpec((c1, D1), lambda i, rs: (0, 0)),   # w1 (resident)
            pl.BlockSpec((1, D1),  lambda i, rs: (0, 0)),   # b1 (resident)
            pl.BlockSpec((c2, D2), lambda i, rs: (0, 0)),   # w2 (resident)
            pl.BlockSpec((1, D2),  lambda i, rs: (0, 0)),   # b2 (resident)
        ],
        out_specs=(
            pl.BlockSpec((tb, DIM), lambda i, rs: (i, 0)),  # embeddings
            pl.BlockSpec((tb, 1),   lambda i, rs: (i, 0)),  # norms
        ),
    )

    emb, norms = pl.pallas_call(
        nae_kernel,
        out_shape=(jax.ShapeDtypeStruct((b_pad, DIM), jnp.float32),
                   jax.ShapeDtypeStruct((b_pad, 1), jnp.float32)),
        grid_spec=grid_spec,
        compiler_params=pltpu.CompilerParams(
            dimension_semantics=("parallel",),       # shard batch across TCs (v7x)
            vmem_limit_bytes=32 * 1024 * 1024,
        ),
    )(rs, x1_bf, x2_bf, w1_bf, b1f, w2_bf, b2f)

    return emb[:B], norms[:B, 0]


def _reference(featmaps, params):
    """Pure-JAX f32 reference of the same (eval-mode) forward pass."""
    x1 = _flatten_fc_input(featmaps['feat_res4']).astype(jnp.float32)
    x2 = _flatten_fc_input(featmaps['feat_res5']).astype(jnp.float32)
    hp = jax.lax.Precision.HIGHEST
    e1 = jnp.dot(x1, params['w1'], precision=hp) + params['b1']
    e1 = (e1 - params['rm1']) / jnp.sqrt(params['rv1'] + BN_EPS) * params['g1'] + params['beta1']
    e2 = jnp.dot(x2, params['w2'], precision=hp) + params['b2']
    e2 = (e2 - params['rm2']) / jnp.sqrt(params['rv2'] + BN_EPS) * params['g2'] + params['beta2']
    emb = jnp.concatenate([e1, e2], axis=1)
    norms = jnp.linalg.norm(emb, ord=2, axis=1, keepdims=True)
    emb_n = emb / jnp.maximum(norms, 1e-12)
    norms_r = (norms - params['rs_m']) / jnp.sqrt(params['rs_v'] + BN_EPS) \
              * params['rs_g'] + params['rs_b']
    return emb_n, jnp.squeeze(norms_r, axis=1)


if __name__ == "__main__":
    key = jax.random.PRNGKey(0)
    kp, kx1, kx2 = jax.random.split(key, 3)
    params = init_params(kp)

    B = 32
    featmaps = {
        'feat_res4': jax.random.normal(kx1, (B, IN_CHANNELS[0], 1, 1), jnp.float32),
        'feat_res5': jax.random.normal(kx2, (B, IN_CHANNELS[1], 1, 1), jnp.float32),
    }

    # block_b=16 so the small demo actually exercises the batch grid (2 tiles).
    emb, norms = norm_aware_embedding(featmaps, params, block_b=16)
    jax.block_until_ready((emb, norms))

    emb_ref, norms_ref = _reference(featmaps, params)
    assert emb.shape == (B, DIM) and norms.shape == (B,)
    # Tolerances account for bf16 matmul inputs (f32 accumulation) vs f32 HIGHEST reference.
    assert jnp.allclose(emb, emb_ref, atol=2e-3, rtol=2e-3), \
        float(jnp.max(jnp.abs(emb - emb_ref)))
    assert jnp.allclose(norms, norms_ref, atol=1e-3, rtol=1e-2), \
        float(jnp.max(jnp.abs(norms - norms_ref)))

    print("KERNEL_OK")
</pallas_src>

<mosaic_0001>
module attributes {stable_mosaic.version = 11 : i64} {
  func.func @nae_kernel(%arg0: i32, %arg1: memref<2xf32, #tpu.memory_space<smem>>, %arg2: memref<16x128xbf16, #tpu.memory_space<vmem>>, %arg3: memref<16x256xbf16, #tpu.memory_space<vmem>>, %arg4: memref<128x128xbf16, #tpu.memory_space<vmem>>, %arg5: memref<1x128xf32, #tpu.memory_space<vmem>>, %arg6: memref<256x128xbf16, #tpu.memory_space<vmem>>, %arg7: memref<1x128xf32, #tpu.memory_space<vmem>>, %arg8: memref<16x256xf32, #tpu.memory_space<vmem>>, %arg9: memref<16x1xf32, #tpu.memory_space<vmem>>) attributes {dimension_semantics = [#tpu.dimension_semantics<parallel>], iteration_bounds = array<i64: 2>, scalar_prefetch = 1 : i64, scratch_operands = 0 : i64, tpu.core_type = #tpu.core_type<tc>, window_params = [{transform_indices = @transform_0, window_bounds = array<i64: 16, 128>}, {transform_indices = @transform_1, window_bounds = array<i64: 16, 256>}, {pipeline_mode = #tpu.pipeline_mode<synchronous>, transform_indices = @transform_2, window_bounds = array<i64: 128, 128>}, {pipeline_mode = #tpu.pipeline_mode<synchronous>, transform_indices = @transform_3, window_bounds = array<i64: 1, 128>}, {pipeline_mode = #tpu.pipeline_mode<synchronous>, transform_indices = @transform_4, window_bounds = array<i64: 256, 128>}, {pipeline_mode = #tpu.pipeline_mode<synchronous>, transform_indices = @transform_5, window_bounds = array<i64: 1, 128>}, {transform_indices = @transform_6, window_bounds = array<i64: 16, 256>}, {transform_indices = @transform_7, window_bounds = array<i64: 16, 1>}]} {
    %c0 = arith.constant 0 : index
    %c0_0 = arith.constant 0 : index
    %0 = vector.load %arg2[%c0, %c0_0] : memref<16x128xbf16, #tpu.memory_space<vmem>>, vector<16x128xbf16>
    %c0_1 = arith.constant 0 : index
    %c0_2 = arith.constant 0 : index
    %1 = vector.load %arg4[%c0_1, %c0_2] : memref<128x128xbf16, #tpu.memory_space<vmem>>, vector<128x128xbf16>
    %cst = arith.constant dense<0.000000e+00> : vector<16x128xf32>
    %2 = tpu.matmul %0, %1, %cst {dimension_numbers = #tpu.dot_dimension_numbers<[1], [0], [0], [1], [0, 0, 1, 1], [], []>} : vector<16x128xbf16>, vector<128x128xbf16>, vector<16x128xf32> -> vector<16x128xf32>
    %c0_3 = arith.constant 0 : index
    %c0_4 = arith.constant 0 : index
    %3 = vector.load %arg5[%c0_3, %c0_4] : memref<1x128xf32, #tpu.memory_space<vmem>>, vector<1x128xf32>
    %4 = vector.broadcast %3 : vector<1x128xf32> to vector<16x128xf32>
    %5 = arith.addf %2, %4 : vector<16x128xf32>
    %c0_5 = arith.constant 0 : index
    %c0_6 = arith.constant 0 : index
    %6 = vector.load %arg3[%c0_5, %c0_6] : memref<16x256xbf16, #tpu.memory_space<vmem>>, vector<16x256xbf16>
    %c0_7 = arith.constant 0 : index
    %c0_8 = arith.constant 0 : index
    %7 = vector.load %arg6[%c0_7, %c0_8] : memref<256x128xbf16, #tpu.memory_space<vmem>>, vector<256x128xbf16>
    %cst_9 = arith.constant dense<0.000000e+00> : vector<16x128xf32>
    %8 = tpu.matmul %6, %7, %cst_9 {dimension_numbers = #tpu.dot_dimension_numbers<[1], [0], [0], [1], [0, 0, 1, 1], [], []>} : vector<16x256xbf16>, vector<256x128xbf16>, vector<16x128xf32> -> vector<16x128xf32>
    %c0_10 = arith.constant 0 : index
    %c0_11 = arith.constant 0 : index
    %9 = vector.load %arg7[%c0_10, %c0_11] : memref<1x128xf32, #tpu.memory_space<vmem>>, vector<1x128xf32>
    %10 = vector.broadcast %9 : vector<1x128xf32> to vector<16x128xf32>
    %11 = arith.addf %8, %10 : vector<16x128xf32>
    %12 = arith.mulf %5, %5 : vector<16x128xf32>
    %cst_12 = arith.constant dense<0.000000e+00> : vector<16xf32>
    %13 = vector.multi_reduction <add>, %12, %cst_12 [1] : vector<16x128xf32> to vector<16xf32>
    %14 = vector.shape_cast %13 : vector<16xf32> to vector<16x1xf32>
    %15 = arith.mulf %11, %11 : vector<16x128xf32>
    %cst_13 = arith.constant dense<0.000000e+00> : vector<16xf32>
    %16 = vector.multi_reduction <add>, %15, %cst_13 [1] : vector<16x128xf32> to vector<16xf32>
    %17 = vector.shape_cast %16 : vector<16xf32> to vector<16x1xf32>
    %18 = arith.addf %14, %17 : vector<16x1xf32>
    %cst_14 = arith.constant 1.000000e-24 : f32
    %19 = vector.broadcast %cst_14 : f32 to vector<16x1xf32>
    %20 = arith.maximumf %18, %19 : vector<16x1xf32>
    %21 = math.rsqrt %20 : vector<16x1xf32>
    %22 = vector.broadcast %21 : vector<16x1xf32> to vector<16x128xf32>
    %23 = arith.mulf %5, %22 : vector<16x128xf32>
    %c0_15 = arith.constant 0 : index
    %c0_16 = arith.constant 0 : index
    %24 = vector.load %arg8[%c0_15, %c0_16] : memref<16x256xf32, #tpu.memory_space<vmem>>, vector<16x128xf32>
    tpu.vector_store %arg8[%c0_15, %c0_16], %23 {strides = array<i32>} : memref<16x256xf32, #tpu.memory_space<vmem>>, vector<16x128xf32>,
    %25 = vector.broadcast %21 : vector<16x1xf32> to vector<16x128xf32>
    %26 = arith.mulf %11, %25 : vector<16x128xf32>
    %c0_17 = arith.constant 0 : index
    %c128 = arith.constant 128 : index
    %27 = vector.load %arg8[%c0_17, %c128] : memref<16x256xf32, #tpu.memory_space<vmem>>, vector<16x128xf32>
    tpu.vector_store %arg8[%c0_17, %c128], %26 {strides = array<i32>} : memref<16x256xf32, #tpu.memory_space<vmem>>, vector<16x128xf32>,
    %28 = arith.mulf %18, %21 : vector<16x1xf32>
    %c0_18 = arith.constant 0 : index
    %29 = memref.load %arg1[%c0_18] : memref<2xf32, #tpu.memory_space<smem>>
    %30 = vector.broadcast %29 : f32 to vector<16x1xf32>
    %31 = arith.mulf %28, %30 : vector<16x1xf32>
    %c1 = arith.constant 1 : index
    %32 = memref.load %arg1[%c1] : memref<2xf32, #tpu.memory_space<smem>>
    %33 = vector.broadcast %32 : f32 to vector<16x1xf32>
    %34 = arith.addf %31, %33 : vector<16x1xf32>
    %c0_19 = arith.constant 0 : index
    %c0_20 = arith.constant 0 : index
    %35 = vector.load %arg9[%c0_19, %c0_20] : memref<16x1xf32, #tpu.memory_space<vmem>>, vector<16x1xf32>
    tpu.vector_store %arg9[%c0_19, %c0_20], %34 {strides = array<i32>} : memref<16x1xf32, #tpu.memory_space<vmem>>, vector<16x1xf32>,
    return
  }
  func.func @transform_0(%arg0: i32, %arg1: memref<2xf32, #tpu.memory_space<smem>>) -> (i32, i32) {
    %c0_i32 = arith.constant 0 : i32
    %c0_i32_0 = arith.constant 0 : i32
    return %arg0, %c0_i32 : i32, i32
  }
  func.func @transform_1(%arg0: i32, %arg1: memref<2xf32, #tpu.memory_space<smem>>) -> (i32, i32) {
    %c0_i32 = arith.constant 0 : i32
    %c0_i32_0 = arith.constant 0 : i32
    return %arg0, %c0_i32 : i32, i32
  }
  func.func @transform_2(%arg0: i32, %arg1: memref<2xf32, #tpu.memory_space<smem>>) -> (i32, i32) {
    %c0_i32 = arith.constant 0 : i32
    %c0_i32_0 = arith.constant 0 : i32
    %c0_i32_1 = arith.constant 0 : i32
    return %c0_i32, %c0_i32_0 : i32, i32
  }
  func.func @transform_3(%arg0: i32, %arg1: memref<2xf32, #tpu.memory_space<smem>>) -> (i32, i32) {
    %c0_i32 = arith.constant 0 : i32
    %c0_i32_0 = arith.constant 0 : i32
    %c0_i32_1 = arith.constant 0 : i32
    return %c0_i32, %c0_i32_0 : i32, i32
  }
  func.func @transform_4(%arg0: i32, %arg1: memref<2xf32, #tpu.memory_space<smem>>) -> (i32, i32) {
    %c0_i32 = arith.constant 0 : i32
    %c0_i32_0 = arith.constant 0 : i32
    %c0_i32_1 = arith.constant 0 : i32
    return %c0_i32, %c0_i32_0 : i32, i32
  }
  func.func @transform_5(%arg0: i32, %arg1: memref<2xf32, #tpu.memory_space<smem>>) -> (i32, i32) {
    %c0_i32 = arith.constant 0 : i32
    %c0_i32_0 = arith.constant 0 : i32
    %c0_i32_1 = arith.constant 0 : i32
    return %c0_i32, %c0_i32_0 : i32, i32
  }
  func.func @transform_6(%arg0: i32, %arg1: memref<2xf32, #tpu.memory_space<smem>>) -> (i32, i32) {
    %c0_i32 = arith.constant 0 : i32
    %c0_i32_0 = arith.constant 0 : i32
    return %arg0, %c0_i32 : i32, i32
  }
  func.func @transform_7(%arg0: i32, %arg1: memref<2xf32, #tpu.memory_space<smem>>) -> (i32, i32) {
    %c0_i32 = arith.constant 0 : i32
    %c0_i32_0 = arith.constant 0 : i32
    return %arg0, %c0_i32 : i32, i32
  }
}

</mosaic_0001>

<bundles_post_ra>
// kernel: tpu_custom_call.1
= control target key start
LH: loop header
LB: loop body
LE: loop exit
PB: predicated region body
PF: predicated region fallthrough
CT: control target
= control target key end

     0   :  { %s1728_s0 = inlined_call_operand.hbm [shape: f32[2], index: 0, kind: input, shape index: {}]   ;;  %s1729_s1 = inlined_call_operand.hbm [shape: bf16[32,128], index: 1, kind: input, shape index: {}]   ;;  %s1730_s2 = inlined_call_operand.hbm [shape: bf16[32,256], index: 2, kind: input, shape index: {}]   ;;  %s1731_s3 = inlined_call_operand.hbm [shape: bf16[128,128], index: 3, kind: input, shape index: {}]   ;;  %s1732_s4 = inlined_call_operand.vmem [shape: f32[1,128], index: 4, kind: input, shape index: {}]   ;;  %s1733_s5 = inlined_call_operand.hbm [shape: bf16[256,128], index: 5, kind: input, shape index: {}]   ;;  %s1734_s6 = inlined_call_operand.vmem [shape: f32[1,128], index: 6, kind: input, shape index: {}]   ;;  %s1735_s7 = inlined_call_operand.hbm [shape: f32[32,256], index: 7, kind: output, shape index: {0}]   ;;  %s1736_s8 = inlined_call_operand.vmem [shape: f32[32,1], index: 8, kind: output, shape index: {1}]  }
   0x1   :  { %1743 = sst [smem:[#allocation21_spill]] %s1729_s1  ;;  %s1126_s29 = scalar_lea.hbm %s1728_s0, 16 }
   0x2   :  { %1744 = sst [smem:[#allocation22_spill]] %s1731_s3  ;;  %p1127_p0 = scmp.ne.s32.totalorder %s1728_s0, %s1126_s29 }
   0x3   :  { %1745 = sst [smem:[#allocation23_spill]] %s1733_s5  ;;  %p1130_p1 = scmp.lt.u32.totalorder %s1126_s29, %s1728_s0 }
   0x5   :  { %p1132_p2 = pnand %p1130_p1, %p1127_p0 }
   0x7   :  { %1135 = shalt.err (!%p1132_p2)  }
   0x8   :  { %s1334_s12 = smov [#allocation3]  }
   0x9   :  { %15 = dma.hbm_to_smem %s1728_s0, 16, %s1334_s12, [#allocation2] }
   0xa   :  { %1296 = dma.done.wait [#allocation2], 16 }
   0xb   :  { %1297 = vsyncadd [#allocation2], 4294967280 }
   0xc   :  { %17 = sfence }
   0xd   :  { %18 = vsyncpa [#allocation5], 0 }
   0xe   :  { %20 = vsyncpa [#allocation5 + $0x1], 0 }
   0xf   :  { %21 = vsyncpa [#allocation8], 0 }
  0x10   :  { %23 = vsyncpa [#allocation8 + $0x1], 0 }
  0x11   :  { %24 = vsyncpa [#allocation11], 0 }
  0x12   :  { %25 = vsyncpa [#allocation6], 0 }
  0x13   :  { %27 = vsyncpa [#allocation6 + $0x1], 0  ;;  %s1405_s15 = smov 0   ;;  %s1407_s16 = smov 0  }
  0x14   :  { %s1409_s17 = smov 0   ;;  %s1411_s18 = smov 0  }
  0x15 LB: > { %1746 = sst [smem:[#allocation19_spill]] %s1328_s17  ;;  %s1426_s0 = sadd.s32 4294967295, %s1332_s18   ;;  %s1332_s18 = sphi %s1411_s18, %s1773_s18   ;;  %s1328_s17 = sphi %s1409_s17, %s1770_s17   ;;  %s1324_s16 = sphi %s1407_s16, %s1772_s16   ;;  %s1320_s15 = sphi %s1405_s15, %s1771_s15  }
  0x16   : > { %s901_s19 = sadd.s32 4294967294, %s1332_s18   ;;  %p53_p3 = scmp.ne.s32.totalorder %s1324_s16, %s1320_s15 }
  0x17   : > { %p1737_p4 = scmp.eq.s32.totalorder %s1426_s0, 0  ;;  %p193_p6 = scmp.eq.s32.totalorder %s901_s19, 1 }
  0x18   : > { %p902_p8 = scmp.ge.s32.totalorder %s1332_s18, 1  ;;  %p226_p10 = scmp.lt.s32.totalorder %s1332_s18, 3 }
  0x19   : > { %p1435_p7 = por %p1737_p4, %p53_p3  ;;  %p1440_p9 = por %p193_p6, %p53_p3 }
  0x1a   : > { %p1445_p11 = pnand %p902_p8, %p226_p10  ;;  %s1335_s23 = smov [#allocation9]  }
  0x1b   : > { %s1747_s20 = scalar_select %p1435_p7, 1, 0 }
  0x1c   : > { %s1748_s21 = scalar_select %p1440_p9, 1, 0 }
  0x1d   : > { %s238_s24 = sshll.u32 %s1335_s23, 4  ;;  %p1027_p12 = pneg %p1445_p11  ;;  %s1449_s24 = int_to_ptr.vmem [resolvable:$true] %s238_s24 }
  0x1e   : > { %s1336_s26 = smov [#allocation10]   ;;  %s1751_s3 = sld [smem:[#allocation22_spill]] }
  0x1f   : > { %p1456_p0 = pnand %p1027_p12, %p1737_p4  ;;  %s254_s27 = sshll.u32 %s1336_s26, 4  ;;  %s1460_s27 = int_to_ptr.vmem [resolvable:$true] %s254_s27 }
  0x21   : > { %p1138_p2 = pneg %p1456_p0 }
  0x24   : > { %s1136_s30 = scalar_lea.hbm %s1751_s3, 1024 }
  0x25   : > { %p1137_p1 = scmp.ne.s32.totalorder %s1751_s3, %s1136_s30  ;;  %p1143_p8 = scmp.lt.u32.totalorder %s1136_s30, %s1751_s3 }
  0x27   : > { %p1139_p3 = pnand %p1138_p2, %p1137_p1 }
  0x29   : > { %p1140_p6 = pneg %p1139_p3 }
  0x2b   : > { %p1145_p10 = pnand %p1143_p8, %p1140_p6 }
  0x2d   : > { %1148 = shalt.err (!%p1145_p10)
}
  0x2e   : > { %s1149_s13 = scalar_lea.vmem %s1449_s24, 1024  ;;  %p1157_p5 = scmp.lt.s32.totalorder %s1449_s24, %s1449_s24 }
  0x2f   : > { %p1150_p12 = scmp.ne.s32.totalorder %s1449_s24, %s1149_s13  ;;  %p1158_p1 = scmp.lt.s32.totalorder %s1149_s13, %s1149_s13 }
  0x31   : > { %p1152_p13 = pnand %p1150_p12, %p1138_p2  ;;  %p1159_p3 = por %p1158_p1, %p1157_p5 }
  0x33   : > { %p1153_p4 = pneg %p1152_p13 }
  0x35   : > { %p1160_p9 = pnand %p1159_p3, %p1153_p4 }
  0x37   : > { %1163 = shalt.err (!%p1160_p9)
}
  0x38   : > { %s1738_s14 = smov 64   ;;  %s1739_s19 = smov 4  }
  0x39   : > { %1030 = dma.hbm_to_vmem [thread:$0]  (!%p1456_p0), %s1751_s3, 1024, %s1449_s24, [#allocation8], %s1738_s14, %s1738_s14, %s1739_s19  }
  0x3a   : > { %s1752_s5 = sld [smem:[#allocation23_spill]] }
  0x40   : > { %s1164_s30 = scalar_lea.hbm %s1752_s5, 2048 }
  0x41   : > { %p1165_p4 = scmp.ne.s32.totalorder %s1752_s5, %s1164_s30  ;;  %p1171_p13 = scmp.lt.u32.totalorder %s1164_s30, %s1752_s5 }
  0x43   : > { %p1167_p5 = pnand %p1165_p4, %p1138_p2 }
  0x45   : > { %p1168_p9 = pneg %p1167_p5 }
  0x47   : > { %p1173_p6 = pnand %p1171_p13, %p1168_p9 }
  0x49   : > { %1176 = shalt.err (!%p1173_p6)
}
  0x4a   : > { %s1177_s24 = scalar_lea.vmem %s1460_s27, 2048  ;;  %p1185_p1 = scmp.lt.s32.totalorder %s1460_s27, %s1460_s27 }
  0x4b   : > { %p1178_p8 = scmp.ne.s32.totalorder %s1460_s27, %s1177_s24  ;;  %p1186_p3 = scmp.lt.s32.totalorder %s1177_s24, %s1177_s24 }
  0x4d   : > { %p1180_p10 = pnand %p1178_p8, %p1138_p2  ;;  %p1187_p4 = por %p1186_p3, %p1185_p1 }
  0x4f   : > { %p1181_p12 = pneg %p1180_p10 }
  0x51   : > { %p1188_p5 = pnand %p1187_p4, %p1181_p12 }
  0x53   : > { %1191 = shalt.err (!%p1188_p5)
}
  0x54   : > { %1033 = dma.hbm_to_vmem [thread:$0]  (!%p1456_p0), %s1752_s5, 2048, %s1460_s27, [#allocation11], %s1738_s14, %s1738_s14, %s1739_s19  }
  0x55   : > { %s1521_s25 = sadd.s32 1, %s1332_s18   ;;  %s40_s26 = sadd.s32 1, %s1328_s17 }
  0x56   : > { %s37_s28 = ssub.s32 %s1332_s18, %s1521_s25  ;;  %p47_p2 = scmp.ne.s32.totalorder %s1328_s17, %s1324_s16 }
  0x57   : > { %p38_p9 = scmp.eq.s32.totalorder %s37_s28, 0  ;;  %p48_p13 = scmp.eq.s32.totalorder %s1332_s18, 0 }
  0x58   : > { %p1753_p6 = scmp.eq.s32.totalorder %s1426_s0, 1  ;;  %p1047_p10 = scmp.lt.s32.totalorder %s1332_s18, 2 }
  0x59   : > { %s1537_s30 = scalar_select %p38_p9, %s1328_s17, %s40_s26  }
  0x5a   : > { %p1531_p8 = por %p1753_p6, %p47_p2  ;;  %p49_p12 = por %p48_p13, %p47_p2 }
  0x5b   : > { %1755 = sst [smem:[#allocation20_spill]] %s1537_s30  ;;  %s1540_s9 = sand.u32 1, %s1328_s17  }
  0x5c   : > { %s1754_s29 = scalar_select %p1531_p8, 1, 0 }
  0x5d   : > { %s906_s27 = sshll.u32 %s1540_s9, 3  ;;  %s957_s10 = sshll.u32 %s1332_s18, 7 }
  0x5e   : > { %s1756_s1 = sld [smem:[#allocation21_spill]]  ;;  %s275_s13 = scalar_lea.vmem [#allocation4], %s906_s27 }
  0x5f   : > { %s282_s23 = sshll.u32 %s275_s13, 4  ;;  %p1551_p0 = pnand %p1047_p10, %p49_p12  ;;  %s1549_s23 = int_to_ptr.vmem [resolvable:$true] %s282_s23 }
  0x60   : > { %s909_s14 = sshll.u32 %s1540_s9, 4  ;;  %s272_s19 = scalar_lea.sflag [#allocation5], %s1540_s9 }
  0x61   : > { %p1194_p3 = pneg %p1551_p0 }
  0x64   : > { %s1547_s24 = scalar_lea.hbm %s1756_s1, %s957_s10  ;;  %s1197_s12 = scalar_lea.hbm %s1756_s1, 256 }
  0x65   : > { %s1192_s11 = scalar_lea.hbm %s1547_s24, 128  ;;  %p1198_p2 = scmp.lt.u32.totalorder %s1547_s24, %s1756_s1 }
  0x66   : > { %p1193_p1 = scmp.ne.s32.totalorder %s1547_s24, %s1192_s11  ;;  %p1199_p9 = scmp.lt.u32.totalorder %s1197_s12, %s1192_s11 }
  0x67   : > { %p1201_p6 = scmp.lt.u32.totalorder %s1192_s11, %s1547_s24 }
  0x68   : > { %p1195_p4 = pnand %p1194_p3, %p1193_p1  ;;  %p1200_p13 = por %p1199_p9, %p1198_p2 }
  0x6a   : > { %p1196_p5 = pneg %p1195_p4  ;;  %p1202_p10 = por %p1201_p6, %p1200_p13 }
  0x6c   : > { %p1203_p12 = pnand %p1202_p10, %p1196_p5 }
  0x6e   : > { %1206 = shalt.err (!%p1203_p12)
}
  0x6f   : > { %s1207_s28 = scalar_lea.vmem %s1549_s23, 128  ;;  %s1339_s27 = smov [#allocation4]  }
  0x70   : > { %p1208_p1 = scmp.ne.s32.totalorder %s1549_s23, %s1207_s28  ;;  %s1212_s10 = sshll.u32 %s1339_s27, 4  ;;  %s1213_s10 = int_to_ptr.vmem [resolvable:$false] %s1212_s10 }
  0x71   : > { %s1214_s3 = scalar_lea.vmem %s1213_s10, 256  ;;  %p1215_p7 = scmp.lt.s32.totalorder %s1549_s23, %s1213_s10 }
  0x72   : > { %p1210_p4 = pnand %p1208_p1, %p1194_p3  ;;  %p1216_p2 = scmp.lt.s32.totalorder %s1214_s3, %s1207_s28 }
  0x74   : > { %p1211_p8 = pneg %p1210_p4  ;;  %p1217_p9 = por %p1216_p2, %p1215_p7 }
  0x76   : > { %p1218_p13 = pnand %p1217_p9, %p1211_p8 }
  0x78   : > { %1221 = shalt.err (!%p1218_p13)
}
  0x79   : > { %s1758_s11 = smov 4   ;;  %s1759_s12 = smov 64  }
  0x7a   : > { %1037 = dma.hbm_to_vmem [thread:$0]  (!%p1551_p0), %s1547_s24, 128, %s1549_s23, %s272_s19, %s1759_s12, %s1759_s12, %s1758_s11  }
  0x7b   : > { %s959_s13 = sshll.u32 %s1332_s18, 8  ;;  %s296_s3 = scalar_lea.vmem [#allocation7], %s909_s14 }
  0x7c   : > { %s1592_s10 = scalar_lea.hbm %s1730_s2, %s959_s13  ;;  %s304_s1 = sshll.u32 %s296_s3, 4  ;;  %s1596_s1 = int_to_ptr.vmem [resolvable:$true] %s304_s1 }
  0x7d   : > { %s1760_s5 = sand.u32 1, %s1332_s18   ;;  %s1222_s17 = scalar_lea.hbm %s1592_s10, 256 }
  0x7e   : > { %s1600_s30 = scalar_lea.sflag [#allocation8], %s1760_s5  ;;  %p1223_p7 = scmp.ne.s32.totalorder %s1592_s10, %s1222_s17 }
  0x7f   : > { %s1227_s9 = scalar_lea.hbm %s1730_s2, 512  ;;  %p1228_p6 = scmp.lt.u32.totalorder %s1592_s10, %s1730_s2 }
  0x80   : > { %p1225_p8 = pnand %p1223_p7, %p1194_p3  ;;  %p1229_p10 = scmp.lt.u32.totalorder %s1227_s9, %s1222_s17 }
  0x81   : > { %p1231_p1 = scmp.lt.u32.totalorder %s1222_s17, %s1592_s10 }
  0x82   : > { %p1226_p5 = pneg %p1225_p8  ;;  %p1230_p12 = por %p1229_p10, %p1228_p6 }
  0x84   : > { %p1232_p4 = por %p1231_p1, %p1230_p12 }
  0x86   : > { %p1233_p2 = pnand %p1232_p4, %p1226_p5 }
  0x88   : > { %1236 = shalt.err (!%p1233_p2)
}
  0x89   : > { %s1237_s5 = scalar_lea.vmem %s1596_s1, 256  ;;  %s1340_s14 = smov [#allocation7]  }
  0x8a   : > { %p1238_p9 = scmp.ne.s32.totalorder %s1596_s1, %s1237_s5  ;;  %s1242_s12 = sshll.u32 %s1340_s14, 4  ;;  %s1243_s12 = int_to_ptr.vmem [resolvable:$false] %s1242_s12 }
  0x8b   : > { %s1244_s13 = scalar_lea.vmem %s1243_s12, 512  ;;  %p1245_p8 = scmp.lt.s32.totalorder %s1596_s1, %s1243_s12 }
  0x8c   : > { %p1240_p13 = pnand %p1238_p9, %p1194_p3  ;;  %p1246_p6 = scmp.lt.s32.totalorder %s1244_s13, %s1237_s5 }
  0x8e   : > { %p1241_p7 = pneg %p1240_p13  ;;  %p1247_p10 = por %p1246_p6, %p1245_p8 }
  0x90   : > { %p1248_p12 = pnand %p1247_p10, %p1241_p7 }
  0x92   : > { %1251 = shalt.err (!%p1248_p12)
}
  0x93   : > { %s1341_s17 = smov 128   ;;  %s1342_s27 = smov 8  }
  0x94   : > { %1040 = dma.hbm_to_vmem [thread:$0]  (!%p1551_p0), %s1592_s10, 256, %s1596_s1, %s1600_s30, %s1341_s17, %s1341_s17, %s1342_s27  }
  0x95   : > { %316 = sbr.rel (%p1445_p11) target bundleno = 597 (0x255), region = 44  ;;  %s1629_s28 = sand.u32 (!%p1445_p11), 1, %s1324_s16  }
  0x96   : > { %s914_s3 = sshll.u32 (!%p1445_p11), %s1629_s28, 3  ;;  %s319_s19 = scalar_lea.sflag (!%p1445_p11), [#allocation5], %s1629_s28 }
  0x97   : > { %s1633_s24 = scalar_lea.vmem (!%p1445_p11), [#allocation4], %s914_s3  ;;  %p1761_p3 = scmp.ne.s32.totalorder (!%p1445_p11), %s1747_s20, 0 }
  0x9c   : > { %1299 = dma.done.wait (%p1761_p3), %s319_s19, 128  }
  0x9d   : > { %1301 = vsyncadd (%p1761_p3), %s319_s19, 4294967168  ;;  %s327_s1 = sand.u32 1, %s1426_s0   ;;  %s915_s22 = sshll.u32 %s1629_s28, 4 }
  0x9e   : > { %s328_s30 = scalar_lea.sflag [#allocation8], %s327_s1  ;;  %s1641_s26 = scalar_lea.vmem [#allocation7], %s915_s22 }
  0x9f   : > { %1303 = dma.done.wait (%p1761_p3), %s328_s30, 256  }
  0xa0   : > { %1305 = vsyncadd (%p1761_p3), %s328_s30, 4294967040  ;;  %p1762_p11 = scmp.eq.s32.totalorder %s1426_s0, 0 }
  0xa2   : > { %1307 = dma.done.wait (%p1762_p11), [#allocation8], 1024   ;;  %p1763_p0 = pmov %p1762_p11 }
  0xa4   : > { %1309 = vsyncadd (%p1763_p0), [#allocation8], 4294966272  ;;  %p1764_p5 = pmov %p1763_p0 }
  0xa5   : > { %p1765_p1 = pmov %p1763_p0 }
  0xa6   : > { %1311 = dma.done.wait (%p1764_p5), [#allocation11], 2048  }
  0xa7   : > { %1313 = vsyncadd (%p1765_p1), [#allocation11], 4294965248  ;;  %v1343_v0 = vmov 0.0   ;;  %vm1344_vm0 = vmmov 0   ;;  %v1094_v1 = vld [vmem:[#allocation9] sm:$0xff]   ;;  %v1097_v4 = vld [vmem:[#allocation9 + $0x8] sm:$0xff]  }
  0xa8   : > { %993 = vmatprep.subr.bf16.mxu0 %v1343_v0  ;;  %1009 = vmatprep.mubr.msk.bf16.mxu0 %vm1344_vm0, %v1343_v0  ;;  %v1095_v2 = vld [vmem:[#allocation10 + $0x40] sm:$0xff]   ;;  %v1098_v5 = vld [vmem:[#allocation10 + $0x48] sm:$0xff]   ;;  %v1100_v7 = vld [vmem:[#allocation9 + $0x10] sm:$0xff]   ;;  %s919_s11 = sshll.u32 %s1426_s0, 1  ;;  %s726_s5 = sld [smem:[#allocation3]]  ;;  %vm734_vm1 = vcmask 7168  }
  0xa9   : > { %994 = vmatpush3.bf16.msra.mxu0 %v1094_v1  ;;  %v1096_v3 = vld [vmem:[#allocation10] sm:$0xff]   ;;  %971 = vmatprep.subr.bf16.mxu1 %v1095_v2  ;;  %v1099_v6 = vld [vmem:[#allocation10 + $0x8] sm:$0xff]   ;;  %v1101_v8 = vld [vmem:[#allocation10 + $0x50] sm:$0xff]   ;;  %p384_p4 = scmp.lt.s32.totalorder %s919_s11, 3  ;;  %s1665_s14 = sld [smem:[#allocation3 + $0x1]] }
  0xaa   : > { %995 = vmatprep.subr.bf16.mxu0 %v1343_v0  ;;  %972 = vmatpush3.bf16.msra.mxu1 %v1096_v3  ;;  %v1102_v9 = vld [vmem:[#allocation10 + $0x10] sm:$0xff]   ;;  %v1103_v10 = vld [vmem:[#allocation9 + $0x18] sm:$0xff]   ;;  %v1107_v13 = vld [vmem:[#allocation10 + $0x60] sm:$0xff]   ;;  %s918_s12 = sshll.u32 %s1629_s28, 5  ;;  %s961_s13 = sshll.u32 %s1426_s0, 9 }
  0xab   : > { %973 = vmatprep.subr.bf16.mxu1 %v1098_v5  ;;  %v1104_v11 = vld [vmem:[#allocation10 + $0x58] sm:$0xff]   ;;  %v1106_v14 = vld [vmem:[#allocation9 + $0x20] sm:$0xff]   ;;  %v1110_v16 = vld [vmem:[#allocation10 + $0x68] sm:$0xff]   ;;  %s1775_s11 = smov (!%p384_p4, %s919_s11), 3  ;;  %s372_s17 = scalar_lea.vmem [#allocation12], %s918_s12 }
  0xac   : > { %v1105_v12 = vld [vmem:[#allocation10 + $0x18] sm:$0xff]   ;;  %v1108_v15 = vld [vmem:[#allocation10 + $0x20] sm:$0xff]   ;;  %v1109_v17 = vld [vmem:[#allocation9 + $0x28] sm:$0xff]   ;;  %s757_s27 = sshll.u32 %s372_s17, 4  ;;  %s920_s3 = sshll.u32 %s1775_s11, 3  ;;  %s1675_s27 = int_to_ptr.vmem [resolvable:$true] %s757_s27 }
  0xad   : > { %996 = vmatpush3.bf16.msra.mxu0 %v1097_v4  ;;  %v1111_v18 = vld [vmem:[#allocation10 + $0x28] sm:$0xff]   ;;  %v1113_v19 = vld [vmem:[#allocation10 + $0x70] sm:$0xff]   ;;  %v1116_v22 = vld [vmem:[#allocation10 + $0x78] sm:$0xff]   ;;  %s1673_s1 = scalar_lea.hbm %s1735_s7, %s961_s13  ;;  %s1680_s30 = scalar_lea.vmem %s1736_s8, %s920_s3 }
  0xae   : > { %997 = vmatprep.subr.bf16.mxu0 %v1343_v0  ;;  %974 = vmatpush3.bf16.msra.mxu1 %v1099_v6  ;;  %v1112_v20 = vld [vmem:[#allocation9 + $0x30] sm:$0xff]   ;;  %v1115_v23 = vld [vmem:[#allocation9 + $0x38] sm:$0xff]   ;;  %v727_v57 = vstv %s726_s5  ;;  %s1252_s20 = scalar_lea.vmem %s1675_s27, 512  ;;  %p1766_p9 = scmp.ne.s32.totalorder %s1754_s29, 0 }
  0xaf   : > { %975 = vmatprep.subr.bf16.mxu1 %v1101_v8  ;;  %v1114_v21 = vld [vmem:[#allocation10 + $0x30] sm:$0xff]   ;;  %v1117_v25 = vld [vmem:[#allocation10 + $0x38] sm:$0xff]   ;;  %v731_v62 = vstv %s1665_s14  ;;  %p1253_p2 = scmp.ne.s32.totalorder %s1675_s27, %s1252_s20  ;;  %s1345_s10 = smov [#allocation12]  }
  0xb0   : > { %v1121_v24 = vld [vmem:[%s1641_s26 + $0x4] ss:$8 sps:$4 sm:$0xff]   ;;  %v1119_v27 = vld [vmem:[%s1641_s26] ss:$8 sps:$4 sm:$0xff]   ;;  %s738_s26 = scalar_lea.sflag [#allocation6], %s1629_s28  ;;  %s1256_s9 = sshll.u32 %s1345_s10, 4  ;;  %s1257_s9 = int_to_ptr.vmem [resolvable:$false] %s1256_s9 }
  0xb1   : > { %998 = vmatpush3.bf16.msra.mxu0 %v1100_v7  ;;  %689 = vmatprep.mubr.bf16.mxu1 %v1121_v24  ;;  %v1118_v26 = vld [vmem:[%s1633_s24] sm:$0xff]   ;;  %p1254_p13 = pnand %p1253_p2, %p1766_p9  ;;  %s1258_s23 = scalar_lea.vmem %s1257_s9, 1024 }
  0xb2   : > { %999 = vmatprep.subr.bf16.mxu0 %v1343_v0  ;;  %976 = vmatpush3.bf16.msra.mxu1 %v1102_v9  ;;  %v921_v28 = vld [vmem:[%s1732_s4] ss:$0 sm:$0xff]  ;;  %p1259_p8 = scmp.lt.s32.totalorder %s1675_s27, %s1257_s9  ;;  %p1260_p6 = scmp.lt.s32.totalorder %s1258_s23, %s1252_s20 }
  0xb3   : > { %977 = vmatprep.subr.bf16.mxu1 %v1104_v11  ;;  %v931_v35 = vld [vmem:[%s1734_s6] ss:$0 sm:$0xff]  ;;  %p1255_p7 = pneg %p1254_p13 }
  0xb4   : > { %p1261_p10 = por %p1260_p6, %p1259_p8 }
  0xb5   : > { %1000 = vmatpush3.bf16.msra.mxu0 %v1103_v10 }
  0xb6   : > { %1001 = vmatprep.subr.bf16.mxu0 %v1343_v0  ;;  %978 = vmatpush3.bf16.msra.mxu1 %v1105_v12  ;;  %p1262_p12 = pnand %p1261_p10, %p1255_p7 }
  0xb7   : > { %979 = vmatprep.subr.bf16.mxu1 %v1107_v13 }
  0xb9   : > { %1002 = vmatpush3.bf16.msra.mxu0 %v1106_v14 }
  0xba   : > { %1003 = vmatprep.subr.bf16.mxu0 %v1343_v0  ;;  %980 = vmatpush3.bf16.msra.mxu1 %v1108_v15 }
  0xbb   : > { %981 = vmatprep.subr.bf16.mxu1 %v1110_v16 }
  0xbd   : > { %1004 = vmatpush3.bf16.msra.mxu0 %v1109_v17 }
  0xbe   : > { %1005 = vmatprep.subr.bf16.mxu0 %v1343_v0  ;;  %982 = vmatpush3.bf16.msra.mxu1 %v1111_v18 }
  0xbf   : > { %983 = vmatprep.subr.bf16.mxu1 %v1113_v19 }
  0xc1   : > { %1006 = vmatpush3.bf16.msra.mxu0 %v1112_v20 }
  0xc2   : > { %1007 = vmatprep.subr.bf16.mxu0 %v1343_v0  ;;  %984 = vmatpush3.bf16.msra.mxu1 %v1114_v21 }
  0xc3   : > { %985 = vmatprep.subr.bf16.mxu1 %v1116_v22 }
  0xc5   : > { %1008 = vmatpush3.bf16.msra.mxu0 %v1115_v23 }
  0xc6   : > { %986 = vmatpush3.bf16.msra.mxu1 %v1117_v25 }
  0xc8   : > { %1010 = vmatmul.mubr.bf16.vlgmr.msra.gmra.mrb[0].mxu0 %v1118_v26 }
  0xc9   : > { %690 = vmatmul.mubr.bf16.vlgmr.msra.gmra.mrb[0].mxu1 %v1119_v27 }
 0x19b   : > { %v503_v29 = vpop.f32.mrb[0].mxu0 }
 0x19c   : > { %v504_v30 = vadd.f32 %v921_v28, %v503_v29  ;;  %v1011_v31 = vpop.f32.mrb[1].mxu0  ;;  %v987_v32 = vpop.f32.mrb[0].mxu1 }
 0x19d   : > { %v506_v33 = vpop.f32.mrb[2].mxu0  ;;  %v988_v36 = vpop.f32.mrb[1].mxu1 }
 0x19e   : > { %v507_v34 = vadd.f32 %v921_v28, %v506_v33  ;;  %v1012_v37 = vpop.f32.mrb[3].mxu0  ;;  %v698_v38 = vmul.f32 %v504_v30, %v504_v30  ;;  %v989_v39 = vadd.f32 %v988_v36, %v987_v32  ;;  %v990_v40 = vpop.f32.mrb[2].mxu1 }
 0x19f   : > { %v991_v41 = vpop.f32.mrb[3].mxu1 }
 0x1a0   : > { %700 = vadd.xlane.f32.xlu0 %v698_v38  ;;  %v699_v42 = vmul.f32 %v507_v34, %v507_v34  ;;  %v692_v43 = vadd.f32 %v989_v39, %v931_v35  ;;  %v992_v44 = vadd.f32 %v991_v41, %v990_v40 }
 0x1a2   : > { %702 = vadd.xlane.f32.xlu1 %v699_v42  ;;  %v695_v45 = vadd.f32 %v992_v44, %v931_v35  ;;  %v704_v46 = vmul.f32 %v692_v43, %v692_v43 }
 0x1a4   : > { %706 = vadd.xlane.f32.xlu0 %v704_v46  ;;  %v705_v47 = vmul.f32 %v695_v45, %v695_v45 }
 0x1a6   : > { %708 = vadd.xlane.f32.xlu1 %v705_v47 }
 0x22d   : > { %v701_v48 = vpop.xlane.xlu0 %700 }
 0x22f   : > { %v703_v49 = vpop.xlane.xlu1 %702 }
 0x231   : > { %v707_v50 = vpop.xlane.xlu0 %706 }
 0x232   : > { %v710_v51 = vadd.f32 %v707_v50, %v701_v48 }
 0x233   : > { %v709_v52 = vpop.xlane.xlu1 %708 }
 0x234   : > { %v712_v53 = vmax.f32 %v710_v51, 1e-24  ;;  %v711_v54 = vadd.f32 %v709_v52, %v703_v49 }
 0x236   : > { %1122 = vrsqrt.f32 %v712_v53  ;;  %v713_v55 = vmax.f32 %v711_v54, 1e-24 }
 0x238   : > { %1124 = vrsqrt.f32 %v713_v55 }
 0x240   : > { %v1123_v56 = vpop.eup %1122 }
 0x241   : > { %v716_v58 = vmul.f32 %v1123_v56, %v504_v30  ;;  %v720_v59 = vmul.f32 %v1123_v56, %v692_v43  ;;  %v724_v60 = vmul.f32 %v1123_v56, %v710_v51 }
 0x242   : > { %v1125_v61 = vpop.eup %1124 }
 0x243   : > { %v728_v63 = vmul.f32 %v727_v57, %v724_v60  ;;  %v717_v0 = vmul.f32 %v1125_v61, %v507_v34  ;;  %v721_v1 = vmul.f32 %v1125_v61, %v695_v45  ;;  %v725_v2 = vmul.f32 %v1125_v61, %v711_v54  ;;  %718 = vst [vmem:[%s372_s17] sm:$0xff] %v716_v58 }
 0x244   : > { %722 = vst [vmem:[%s372_s17 + $0x8] sm:$0xff] %v720_v59 }
 0x245   : > { %v732_v3 = vadd.f32 %v731_v62, %v728_v63  ;;  %v729_v4 = vmul.f32 %v727_v57, %v725_v2  ;;  %719 = vst [vmem:[%s372_s17 + $0x10] sm:$0xff] %v717_v0  ;;  %723 = vst [vmem:[%s372_s17 + $0x18] sm:$0xff] %v721_v1 }
 0x246   : > { %1265 = shalt.err (!%p1262_p12)
}
 0x247   : > { %s1266_s11 = scalar_lea.hbm %s1673_s1, 512  ;;  %s1270_s12 = scalar_lea.hbm %s1735_s7, 1024 }
 0x248   : > { %p1267_p3 = scmp.ne.s32.totalorder %s1673_s1, %s1266_s11  ;;  %p1271_p5 = scmp.lt.u32.totalorder %s1673_s1, %s1735_s7 }
 0x249   : > { %p1272_p1 = scmp.lt.u32.totalorder %s1270_s12, %s1266_s11  ;;  %p1274_p2 = scmp.lt.u32.totalorder %s1266_s11, %s1673_s1 }
 0x24a   : > { %p1268_p11 = pnand %p1267_p3, %p1766_p9 }
 0x24b   : > { %p1273_p4 = por %p1272_p1, %p1271_p5 }
 0x24c   : > { %p1269_p0 = pneg %p1268_p11 }
 0x24d   : > { %p1275_p13 = por %p1274_p2, %p1273_p4 }
 0x24f   : > { %p1276_p7 = pnand %p1275_p13, %p1269_p0 }
 0x251   : > { %1279 = shalt.err (!%p1276_p7)
}
 0x252   : > { %s1346_s3 = smov 256   ;;  %s1347_s19 = smov 16   ;;  %735 = vst.msk [vmem:[%s1680_s30] sm:$0xff] %vm734_vm1, %v732_v3  ;;  %v733_v5 = vadd.f32 %v731_v62, %v729_v4 }
 0x253   : > { %1025 = dma.vmem_to_hbm [thread:$0]  (%p1766_p9), %s1675_s27, 512, %s1673_s1, %s738_s26, %s1346_s3, %s1346_s3, %s1347_s19  }
 0x254   : > { %736 = vst.msk [vmem:[%s1680_s30 + $0x8] sm:$0xff] %vm734_vm1, %v733_v5 }
 0x255 PF: > { %s776_s24 = sand.u32 1, %s1320_s15   ;;  %p1767_p8 = scmp.ne.s32.totalorder %s1748_s21, 0 }
 0x256   : > { %p1768_p6 = scmp.ge.s32.totalorder %s1332_s18, 2  ;;  %s777_s0 = scalar_lea.sflag [#allocation6], %s776_s24 }
 0x258   : > { %p1042_p10 = pnand %p1768_p6, %p1767_p8 }
 0x25a   : > { %1315 = dma.done.wait (!%p1042_p10), %s777_s0, 512  }
 0x25b   : > { %1317 = vsyncadd (!%p1042_p10), %s777_s0, 4294966784  ;;  %s1769_s29 = sld [smem:[#allocation19_spill]]  ;;  %s1770_s17 = sld [smem:[#allocation20_spill]] }
 0x25c   : > { %p30_p9 = scmp.ge.s32.totalorder %s1521_s25, 4   ;;  %s1771_s15 = smov %s1324_s16 }
 0x25d   : > { %s1773_s18 = smov %s1521_s25 }
 0x25e   :  { %32 = sbr.rel (!%p30_p9) target bundleno = 21 (0x15), region = 122 }
 0x261   : > { %s1772_s16 = smov %s1769_s29 }
 0x265   :  { %790 = vsyncpa [#allocation5], 1 }
 0x266   :  { %792 = vsyncpa [#allocation5 + $0x1], 1 }
 0x267   :  { %793 = vsyncpa [#allocation8], 1 }
 0x268   :  { %795 = vsyncpa [#allocation8 + $0x1], 1 }
 0x269   :  { %796 = vsyncpa [#allocation11], 1 }
 0x26a   :  { %797 = vsyncpa [#allocation6], 1 }
 0x26b   :  { %799 = vsyncpa [#allocation6 + $0x1], 1 }

</bundles_post_ra>
